<compile_context>
chip_gen: v5e
topology: v5e:2x2
jax: 0.10.0
libtpu: 0.0.40
codegen_flags: <defaults>
</compile_context>

<pallas_src>
import functools
import math

import jax
import jax.numpy as jnp
from jax.experimental import pallas as pl
from jax.experimental.pallas import tpu as pltpu


_VMEM_LIMIT_BYTES = 32 * 1024 * 1024    # scoped VMEM limit (safe on v5e/v6e/v7x)
_VMEM_WORKSET_BYTES = 16 * 1024 * 1024  # budget incl. dbl-buffered I/O + f32 temps
_MAX_PACK_LANES = 512                   # cap on packed slab width k*C


def _cdiv(a, b):
    return (a + b - 1) // b


def _round_up(x, m):
    return _cdiv(x, m) * m


def _choose_tm(rows, lanes, itemsize):
    """Row tile: VMEM-budgeted (incl. f32 temps), capped at 1024 rows,
    >=8 grid steps when rows allow, multiple of the sublane pack."""
    pack = max(8, 32 // itemsize)            # 8 for f32, 16 for bf16
    if rows <= pack:
        return rows                          # single full-extent block
    # 2x double-buffered in + out (input dtype) plus ~6 tile-sized f32 temps.
    bytes_per_row = lanes * (4 * itemsize + 24)
    tm = max(pack, _VMEM_WORKSET_BYTES // bytes_per_row)
    tm = min(tm, 1024)                       # roofline saturates at ~512-1024 rows
    # Aim for >=8 grid steps (>=4 per TensorCore on v7x), but never shrink
    # below 256-row tiles so per-step overhead (~0.35us) stays amortized.
    step_tm = _round_up(_cdiv(rows, 8), pack)
    tm = min(tm, max(step_tm, 256))
    tm = max(pack, (tm // pack) * pack)
    return min(tm, rows)


def _choose_thw(n_batch, hw, c, itemsize):
    """Spatial (lane) tile for the channels_first path."""
    if hw <= 128:
        return hw                            # full extent (always legal)
    bytes_per_col = c * (4 * itemsize + 24)
    t = max(128, _VMEM_WORKSET_BYTES // bytes_per_col)
    t = min(t, 8192)
    # >=8 total grid steps across (batch, spatial) when the tensor allows,
    # without dropping below 512-lane tiles.
    per_batch_steps = _cdiv(8, max(n_batch, 1))
    step_t = _round_up(_cdiv(hw, per_batch_steps), 128)
    t = min(t, max(step_t, 512))
    t = max(128, (t // 128) * 128)
    return min(t, _round_up(hw, 128))


# ----------------------------------------------------------------------------
# Kernels
# ----------------------------------------------------------------------------
def _ln_rows_kernel(x_ref, w_ref, b_ref, o_ref, *, eps):
    """Generic path: x_ref (tm, C); normalize each row over the lane axis."""
    x = x_ref[...].astype(jnp.float32)
    inv_c = 1.0 / x.shape[-1]
    mean = jnp.sum(x, axis=-1, keepdims=True) * inv_c
    ex2 = jnp.sum(x * x, axis=-1, keepdims=True) * inv_c
    var = jnp.maximum(ex2 - mean * mean, 0.0)
    inv = jax.lax.rsqrt(var + eps)
    o_ref[...] = ((x - mean) * inv * w_ref[...] + b_ref[...]).astype(o_ref.dtype)


def _ln_rows_packed_kernel(x_ref, w_ref, b_ref, g_ref, gt_ref, o_ref, *, eps, c):
    """Lane-dense path: x_ref (tm, k*C), k original rows packed per slab.

    Group sums / group broadcasts use the otherwise-idle MXU against hoisted
    0/1 indicator matrices (g: (kC, k), gt: (k, kC)).  Operands are split
    hi/lo into bf16 so single-pass bf16 matmuls reproduce f32-accurate
    results independent of the default matmul precision.  rsqrt stays at
    per-group (tm, k) granularity (one vreg row per 8 rows on the EUP).
    """
    x = x_ref[...].astype(jnp.float32)
    g = g_ref[...]                                   # (kC, k)  bf16, 0/1
    gt = gt_ref[...]                                 # (k, kC)  bf16, 0/1

    def split(v):                                    # v = hi + lo to ~2^-16 rel
        hi = v.astype(jnp.bfloat16)
        lo = (v - hi.astype(jnp.float32)).astype(jnp.bfloat16)
        return hi, lo

    def gsum(v):                                     # (tm, kC) -> exact (tm, k)
        hi, lo = split(v)
        return (jnp.dot(hi, g, preferred_element_type=jnp.float32)
                + jnp.dot(lo, g, preferred_element_type=jnp.float32))

    def gbcast(v):                                   # (tm, k) -> (tm, kC)
        hi, lo = split(v)
        return (jnp.dot(hi, gt, preferred_element_type=jnp.float32)
                + jnp.dot(lo, gt, preferred_element_type=jnp.float32))

    inv_c = 1.0 / c
    mean = gsum(x) * inv_c                           # (tm, k)
    ex2 = gsum(x * x) * inv_c                        # (tm, k)
    var = jnp.maximum(ex2 - mean * mean, 0.0)
    inv = jax.lax.rsqrt(var + eps)                   # EUP at group granularity
    inv_b = gbcast(inv)                              # (tm, kC)
    nmi_b = gbcast(-(mean * inv))                    # (tm, kC)

    w = w_ref[...]                                   # (1, kC) f32
    b = b_ref[...]
    # y = (x - mean) * inv * w + b  ==  x*(inv*w) + ((-mean*inv)*w + b)
    o_ref[...] = (x * (inv_b * w) + (nmi_b * w + b)).astype(o_ref.dtype)


def _ln_cfirst_kernel(x_ref, w_ref, b_ref, o_ref, *, eps):
    """channels_first path: x_ref (C, thw); normalize each column over C."""
    x = x_ref[...].astype(jnp.float32)
    inv_c = 1.0 / x.shape[0]
    mean = jnp.sum(x, axis=0, keepdims=True) * inv_c
    ex2 = jnp.sum(x * x, axis=0, keepdims=True) * inv_c
    var = jnp.maximum(ex2 - mean * mean, 0.0)
    inv = jax.lax.rsqrt(var + eps)
    o_ref[...] = ((x - mean) * inv * w_ref[...] + b_ref[...]).astype(o_ref.dtype)


# ----------------------------------------------------------------------------
# Wrappers
# ----------------------------------------------------------------------------
def _pack_indicators(c, k):
    """0/1 group-indicator matrices (bf16-exact), built once per call."""
    kc = k * c
    lane_grp = jnp.arange(kc, dtype=jnp.int32) // c
    grp = jnp.arange(k, dtype=jnp.int32)
    g = (lane_grp[:, None] == grp[None, :]).astype(jnp.bfloat16)   # (kc, k)
    return g, g.T                                                  # (kc,k), (k,kc)


def _layer_norm_rows(x2d, weight, bias, eps):
    """Row-wise layernorm over the last axis of a 2D array via Pallas."""
    n, c = x2d.shape
    itemsize = x2d.dtype.itemsize
    w32 = weight.astype(jnp.float32)
    b32 = bias.astype(jnp.float32)

    # Lane-dense packing: smallest k with (k*C) % 128 == 0, so every load and
    # store is a full (unmasked) lane slab.
    k = 128 // math.gcd(c, 128)
    kc = k * c
    pack = (k > 1) and (kc <= _MAX_PACK_LANES) and (n % k == 0)

    if pack:
        rows = n // k
        xp = x2d.reshape(rows, kc)                    # free, contiguous reshape
        wp = jnp.tile(w32, k).reshape(1, kc)
        bp = jnp.tile(b32, k).reshape(1, kc)
        g, gt = _pack_indicators(c, k)                # hoisted out of the kernel
        tm = _choose_tm(rows, kc, itemsize)
        grid = (_cdiv(rows, tm),)                     # ragged last block is masked

        out = pl.pallas_call(
            functools.partial(_ln_rows_packed_kernel, eps=eps, c=c),
            out_shape=jax.ShapeDtypeStruct((rows, kc), x2d.dtype),
            grid_spec=pltpu.PrefetchScalarGridSpec(
                num_scalar_prefetch=0,
                grid=grid,
                in_specs=[
                    pl.BlockSpec((tm, kc), lambda i: (i, 0)),
                    pl.BlockSpec((1, kc), lambda i: (0, 0)),     # resident
                    pl.BlockSpec((1, kc), lambda i: (0, 0)),     # resident
                    pl.BlockSpec((kc, k), lambda i: (0, 0)),     # resident
                    pl.BlockSpec((k, kc), lambda i: (0, 0)),     # resident
                ],
                out_specs=pl.BlockSpec((tm, kc), lambda i: (i, 0)),
            ),
            compiler_params=pltpu.CompilerParams(
                dimension_semantics=("parallel",),
                vmem_limit_bytes=_VMEM_LIMIT_BYTES,
            ),
        )(xp, wp, bp, g, gt)
        return out.reshape(n, c)

    # Fallback: C on lanes directly (lane-dense whenever C % 128 == 0).
    tm = _choose_tm(n, c, itemsize)
    grid = (_cdiv(n, tm),)
    out = pl.pallas_call(
        functools.partial(_ln_rows_kernel, eps=eps),
        out_shape=jax.ShapeDtypeStruct((n, c), x2d.dtype),
        grid_spec=pltpu.PrefetchScalarGridSpec(
            num_scalar_prefetch=0,
            grid=grid,
            in_specs=[
                pl.BlockSpec((tm, c), lambda i: (i, 0)),
                pl.BlockSpec((1, c), lambda i: (0, 0)),
                pl.BlockSpec((1, c), lambda i: (0, 0)),
            ],
            out_specs=pl.BlockSpec((tm, c), lambda i: (i, 0)),
        ),
        compiler_params=pltpu.CompilerParams(
            dimension_semantics=("parallel",),
            vmem_limit_bytes=_VMEM_LIMIT_BYTES,
        ),
    )(x2d, w32.reshape(1, c), b32.reshape(1, c))
    return out


def _layer_norm_channels_first(x, weight, bias, eps):
    """NCHW layernorm over C without transposes: reduce over the sublane axis."""
    b, c = x.shape[0], x.shape[1]
    hw = 1
    for d in x.shape[2:]:
        hw *= d
    x3 = x.reshape(b, c, hw)                          # free reshape
    itemsize = x.dtype.itemsize

    thw = _choose_thw(b, hw, c, itemsize)
    grid = (b, _cdiv(hw, thw))

    w2 = weight.astype(jnp.float32).reshape(c, 1)     # resident; (C,1) is fine
    b2 = bias.astype(jnp.float32).reshape(c, 1)       # while HBM-bound

    out = pl.pallas_call(
        functools.partial(_ln_cfirst_kernel, eps=eps),
        out_shape=jax.ShapeDtypeStruct((b, c, hw), x.dtype),
        grid_spec=pltpu.PrefetchScalarGridSpec(
            num_scalar_prefetch=0,
            grid=grid,
            in_specs=[
                pl.BlockSpec((None, c, thw), lambda i, j: (i, 0, j)),
                pl.BlockSpec((c, 1), lambda i, j: (0, 0)),
                pl.BlockSpec((c, 1), lambda i, j: (0, 0)),
            ],
            out_specs=pl.BlockSpec((None, c, thw), lambda i, j: (i, 0, j)),
        ),
        compiler_params=pltpu.CompilerParams(
            dimension_semantics=("parallel", "parallel"),
            vmem_limit_bytes=_VMEM_LIMIT_BYTES,
        ),
    )(x3, w2, b2)
    return out.reshape(x.shape)


class LayerNorm:
    """JAX/Pallas port of the PyTorch LayerNorm module (forward only)."""

    def __init__(self, normalized_shape, eps=1e-6, data_format="channels_last"):
        if data_format not in ["channels_last", "channels_first"]:
            raise NotImplementedError
        if isinstance(normalized_shape, (tuple, list)):
            assert len(normalized_shape) == 1
            normalized_shape = normalized_shape[0]
        self.normalized_shape = int(normalized_shape)
        self.eps = float(eps)
        self.data_format = data_format
        # nn.Parameter(ones/zeros) equivalents.
        self.weight = jnp.ones((self.normalized_shape,), dtype=jnp.float32)
        self.bias = jnp.zeros((self.normalized_shape,), dtype=jnp.float32)

    def __call__(self, x):
        if self.data_format == "channels_last":
            c = x.shape[-1]
            assert c == self.normalized_shape
            lead = x.shape[:-1]
            y = _layer_norm_rows(x.reshape(-1, c), self.weight, self.bias, self.eps)
            return y.reshape(*lead, c)
        else:  # channels_first: normalize over axis 1 (C), no transposes
            assert x.shape[1] == self.normalized_shape
            return _layer_norm_channels_first(x, self.weight, self.bias, self.eps)


# ----------------------------------------------------------------------------
# References + smoke test
# ----------------------------------------------------------------------------
def _ref_layernorm_last(x, w, b, eps):
    mean = jnp.mean(x, axis=-1, keepdims=True)
    var = jnp.mean((x - mean) ** 2, axis=-1, keepdims=True)
    return (x - mean) / jnp.sqrt(var + eps) * w + b


def _ref_layernorm_first(x, w, b, eps):
    u = jnp.mean(x, axis=1, keepdims=True)
    s = jnp.mean((x - u) ** 2, axis=1, keepdims=True)
    xn = (x - u) / jnp.sqrt(s + eps)
    return w[None, :, None, None] * xn + b[None, :, None, None]


if __name__ == "__main__":
    key = jax.random.PRNGKey(0)
    ks = jax.random.split(key, 8)

    # 1) channels_last, lane-dense packed path (C=32 -> k=4, 128 lanes).
    x1 = jax.random.normal(ks[0], (2, 8, 8, 32), dtype=jnp.float32)
    ln1 = LayerNorm(32, eps=1e-6, data_format="channels_last")
    ln1.weight = 1.0 + 0.1 * jax.random.normal(ks[1], (32,), dtype=jnp.float32)
    ln1.bias = 0.1 * jax.random.normal(ks[2], (32,), dtype=jnp.float32)
    y1 = jax.block_until_ready(ln1(x1))
    r1 = _ref_layernorm_last(x1, ln1.weight, ln1.bias, 1e-6)
    assert y1.shape == x1.shape
    assert jnp.max(jnp.abs(y1 - r1)) < 2e-4

    # 2) channels_first NCHW (C on sublanes, spatial lane-dense, no transposes).
    x2 = jax.random.normal(ks[3], (2, 4, 16, 16), dtype=jnp.float32)
    ln2 = LayerNorm(4, eps=1e-6, data_format="channels_first")
    ln2.weight = 1.0 + 0.1 * jax.random.normal(ks[4], (4,), dtype=jnp.float32)
    ln2.bias = 0.1 * jax.random.normal(ks[5], (4,), dtype=jnp.float32)
    y2 = jax.block_until_ready(ln2(x2))
    r2 = _ref_layernorm_first(x2, ln2.weight, ln2.bias, 1e-6)
    assert y2.shape == x2.shape
    assert jnp.max(jnp.abs(y2 - r2)) < 2e-4

    # 3) channels_last, generalized packing (C=48 -> k=8, 384 lanes).
    x3 = jax.random.normal(ks[6], (2, 8, 48), dtype=jnp.float32)
    ln3 = LayerNorm(48, eps=1e-6, data_format="channels_last")
    y3 = jax.block_until_ready(ln3(x3))
    r3 = _ref_layernorm_last(x3, ln3.weight, ln3.bias, 1e-6)
    assert y3.shape == x3.shape
    assert jnp.max(jnp.abs(y3 - r3)) < 2e-4

    # 4) channels_last generic fallback (row count not divisible by k).
    x4 = jax.random.normal(ks[7], (2, 7, 48), dtype=jnp.float32)
    ln4 = LayerNorm(48, eps=1e-6, data_format="channels_last")
    y4 = jax.block_until_ready(ln4(x4))
    r4 = _ref_layernorm_last(x4, ln4.weight, ln4.bias, 1e-6)
    assert y4.shape == x4.shape
    assert jnp.max(jnp.abs(y4 - r4)) < 2e-4

    print("KERNEL_OK")
</pallas_src>

<mosaic_0001>
module attributes {stable_mosaic.version = 11 : i64} {
  func.func @_ln_rows_packed_kernel(%arg0: i32, %arg1: memref<32x128xf32, #tpu.memory_space<vmem>>, %arg2: memref<1x128xf32, #tpu.memory_space<vmem>>, %arg3: memref<1x128xf32, #tpu.memory_space<vmem>>, %arg4: memref<128x4xbf16, #tpu.memory_space<vmem>>, %arg5: memref<4x128xbf16, #tpu.memory_space<vmem>>, %arg6: memref<32x128xf32, #tpu.memory_space<vmem>>) attributes {dimension_semantics = [#tpu.dimension_semantics<parallel>], iteration_bounds = array<i64: 1>, scalar_prefetch = 0 : i64, scratch_operands = 0 : i64, tpu.core_type = #tpu.core_type<tc>, window_params = [{transform_indices = @transform_0, window_bounds = array<i64: 32, 128>}, {pipeline_mode = #tpu.pipeline_mode<synchronous>, transform_indices = @transform_1, window_bounds = array<i64: 1, 128>}, {pipeline_mode = #tpu.pipeline_mode<synchronous>, transform_indices = @transform_2, window_bounds = array<i64: 1, 128>}, {pipeline_mode = #tpu.pipeline_mode<synchronous>, transform_indices = @transform_3, window_bounds = array<i64: 128, 4>}, {pipeline_mode = #tpu.pipeline_mode<synchronous>, transform_indices = @transform_4, window_bounds = array<i64: 4, 128>}, {transform_indices = @transform_5, window_bounds = array<i64: 32, 128>}]} {
    %c0 = arith.constant 0 : index
    %c0_0 = arith.constant 0 : index
    %0 = vector.load %arg1[%c0, %c0_0] : memref<32x128xf32, #tpu.memory_space<vmem>>, vector<32x128xf32>
    %c0_1 = arith.constant 0 : index
    %c0_2 = arith.constant 0 : index
    %1 = vector.load %arg4[%c0_1, %c0_2] : memref<128x4xbf16, #tpu.memory_space<vmem>>, vector<128x4xbf16>
    %c0_3 = arith.constant 0 : index
    %c0_4 = arith.constant 0 : index
    %2 = vector.load %arg5[%c0_3, %c0_4] : memref<4x128xbf16, #tpu.memory_space<vmem>>, vector<4x128xbf16>
    %3 = arith.truncf %0 : vector<32x128xf32> to vector<32x128xbf16>
    %4 = arith.extf %3 : vector<32x128xbf16> to vector<32x128xf32>
    %5 = arith.subf %0, %4 : vector<32x128xf32>
    %6 = arith.truncf %5 : vector<32x128xf32> to vector<32x128xbf16>
    %cst = arith.constant dense<0.000000e+00> : vector<32x4xf32>
    %7 = tpu.matmul %3, %1, %cst {dimension_numbers = #tpu.dot_dimension_numbers<[1], [0], [0], [1], [0, 0, 1, 1], [], []>} : vector<32x128xbf16>, vector<128x4xbf16>, vector<32x4xf32> -> vector<32x4xf32>
    %cst_5 = arith.constant dense<0.000000e+00> : vector<32x4xf32>
    %8 = tpu.matmul %6, %1, %cst_5 {dimension_numbers = #tpu.dot_dimension_numbers<[1], [0], [0], [1], [0, 0, 1, 1], [], []>} : vector<32x128xbf16>, vector<128x4xbf16>, vector<32x4xf32> -> vector<32x4xf32>
    %9 = arith.addf %7, %8 : vector<32x4xf32>
    %cst_6 = arith.constant 3.125000e-02 : f32
    %10 = vector.broadcast %cst_6 : f32 to vector<32x4xf32>
    %11 = arith.mulf %9, %10 : vector<32x4xf32>
    %12 = arith.mulf %0, %0 : vector<32x128xf32>
    %13 = arith.truncf %12 : vector<32x128xf32> to vector<32x128xbf16>
    %14 = arith.extf %13 : vector<32x128xbf16> to vector<32x128xf32>
    %15 = arith.subf %12, %14 : vector<32x128xf32>
    %16 = arith.truncf %15 : vector<32x128xf32> to vector<32x128xbf16>
    %cst_7 = arith.constant dense<0.000000e+00> : vector<32x4xf32>
    %17 = tpu.matmul %13, %1, %cst_7 {dimension_numbers = #tpu.dot_dimension_numbers<[1], [0], [0], [1], [0, 0, 1, 1], [], []>} : vector<32x128xbf16>, vector<128x4xbf16>, vector<32x4xf32> -> vector<32x4xf32>
    %cst_8 = arith.constant dense<0.000000e+00> : vector<32x4xf32>
    %18 = tpu.matmul %16, %1, %cst_8 {dimension_numbers = #tpu.dot_dimension_numbers<[1], [0], [0], [1], [0, 0, 1, 1], [], []>} : vector<32x128xbf16>, vector<128x4xbf16>, vector<32x4xf32> -> vector<32x4xf32>
    %19 = arith.addf %17, %18 : vector<32x4xf32>
    %cst_9 = arith.constant 3.125000e-02 : f32
    %20 = vector.broadcast %cst_9 : f32 to vector<32x4xf32>
    %21 = arith.mulf %19, %20 : vector<32x4xf32>
    %22 = arith.mulf %11, %11 : vector<32x4xf32>
    %23 = arith.subf %21, %22 : vector<32x4xf32>
    %cst_10 = arith.constant 0.000000e+00 : f32
    %24 = vector.broadcast %cst_10 : f32 to vector<32x4xf32>
    %25 = arith.maximumf %23, %24 : vector<32x4xf32>
    %cst_11 = arith.constant 9.99999997E-7 : f32
    %26 = vector.broadcast %cst_11 : f32 to vector<32x4xf32>
    %27 = arith.addf %25, %26 : vector<32x4xf32>
    %28 = math.rsqrt %27 : vector<32x4xf32>
    %29 = arith.truncf %28 : vector<32x4xf32> to vector<32x4xbf16>
    %30 = arith.extf %29 : vector<32x4xbf16> to vector<32x4xf32>
    %31 = arith.subf %28, %30 : vector<32x4xf32>
    %32 = arith.truncf %31 : vector<32x4xf32> to vector<32x4xbf16>
    %cst_12 = arith.constant dense<0.000000e+00> : vector<32x128xf32>
    %33 = tpu.matmul %29, %2, %cst_12 {dimension_numbers = #tpu.dot_dimension_numbers<[1], [0], [0], [1], [0, 0, 1, 1], [], []>} : vector<32x4xbf16>, vector<4x128xbf16>, vector<32x128xf32> -> vector<32x128xf32>
    %cst_13 = arith.constant dense<0.000000e+00> : vector<32x128xf32>
    %34 = tpu.matmul %32, %2, %cst_13 {dimension_numbers = #tpu.dot_dimension_numbers<[1], [0], [0], [1], [0, 0, 1, 1], [], []>} : vector<32x4xbf16>, vector<4x128xbf16>, vector<32x128xf32> -> vector<32x128xf32>
    %35 = arith.addf %33, %34 : vector<32x128xf32>
    %36 = arith.mulf %11, %28 : vector<32x4xf32>
    %cst_14 = arith.constant 0.000000e+00 : f32
    %37 = vector.broadcast %cst_14 : f32 to vector<32x4xf32>
    %38 = arith.subf %37, %36 : vector<32x4xf32>
    %39 = arith.truncf %38 : vector<32x4xf32> to vector<32x4xbf16>
    %40 = arith.extf %39 : vector<32x4xbf16> to vector<32x4xf32>
    %41 = arith.subf %38, %40 : vector<32x4xf32>
    %42 = arith.truncf %41 : vector<32x4xf32> to vector<32x4xbf16>
    %cst_15 = arith.constant dense<0.000000e+00> : vector<32x128xf32>
    %43 = tpu.matmul %39, %2, %cst_15 {dimension_numbers = #tpu.dot_dimension_numbers<[1], [0], [0], [1], [0, 0, 1, 1], [], []>} : vector<32x4xbf16>, vector<4x128xbf16>, vector<32x128xf32> -> vector<32x128xf32>
    %cst_16 = arith.constant dense<0.000000e+00> : vector<32x128xf32>
    %44 = tpu.matmul %42, %2, %cst_16 {dimension_numbers = #tpu.dot_dimension_numbers<[1], [0], [0], [1], [0, 0, 1, 1], [], []>} : vector<32x4xbf16>, vector<4x128xbf16>, vector<32x128xf32> -> vector<32x128xf32>
    %45 = arith.addf %43, %44 : vector<32x128xf32>
    %c0_17 = arith.constant 0 : index
    %c0_18 = arith.constant 0 : index
    %46 = vector.load %arg2[%c0_17, %c0_18] : memref<1x128xf32, #tpu.memory_space<vmem>>, vector<1x128xf32>
    %c0_19 = arith.constant 0 : index
    %c0_20 = arith.constant 0 : index
    %47 = vector.load %arg3[%c0_19, %c0_20] : memref<1x128xf32, #tpu.memory_space<vmem>>, vector<1x128xf32>
    %48 = vector.broadcast %46 : vector<1x128xf32> to vector<32x128xf32>
    %49 = arith.mulf %35, %48 : vector<32x128xf32>
    %50 = arith.mulf %0, %49 : vector<32x128xf32>
    %51 = vector.broadcast %46 : vector<1x128xf32> to vector<32x128xf32>
    %52 = arith.mulf %45, %51 : vector<32x128xf32>
    %53 = vector.broadcast %47 : vector<1x128xf32> to vector<32x128xf32>
    %54 = arith.addf %52, %53 : vector<32x128xf32>
    %55 = arith.addf %50, %54 : vector<32x128xf32>
    %c0_21 = arith.constant 0 : index
    %c0_22 = arith.constant 0 : index
    %56 = vector.load %arg6[%c0_21, %c0_22] : memref<32x128xf32, #tpu.memory_space<vmem>>, vector<32x128xf32>
    tpu.vector_store %arg6[%c0_21, %c0_22], %55 {strides = array<i32>} : memref<32x128xf32, #tpu.memory_space<vmem>>, vector<32x128xf32>,
    return
  }
  func.func @transform_0(%arg0: i32) -> (i32, i32) {
    %c0_i32 = arith.constant 0 : i32
    %c0_i32_0 = arith.constant 0 : i32
    return %arg0, %c0_i32 : i32, i32
  }
  func.func @transform_1(%arg0: i32) -> (i32, i32) {
    %c0_i32 = arith.constant 0 : i32
    %c0_i32_0 = arith.constant 0 : i32
    %c0_i32_1 = arith.constant 0 : i32
    return %c0_i32, %c0_i32_0 : i32, i32
  }
  func.func @transform_2(%arg0: i32) -> (i32, i32) {
    %c0_i32 = arith.constant 0 : i32
    %c0_i32_0 = arith.constant 0 : i32
    %c0_i32_1 = arith.constant 0 : i32
    return %c0_i32, %c0_i32_0 : i32, i32
  }
  func.func @transform_3(%arg0: i32) -> (i32, i32) {
    %c0_i32 = arith.constant 0 : i32
    %c0_i32_0 = arith.constant 0 : i32
    %c0_i32_1 = arith.constant 0 : i32
    return %c0_i32, %c0_i32_0 : i32, i32
  }
  func.func @transform_4(%arg0: i32) -> (i32, i32) {
    %c0_i32 = arith.constant 0 : i32
    %c0_i32_0 = arith.constant 0 : i32
    %c0_i32_1 = arith.constant 0 : i32
    return %c0_i32, %c0_i32_0 : i32, i32
  }
  func.func @transform_5(%arg0: i32) -> (i32, i32) {
    %c0_i32 = arith.constant 0 : i32
    %c0_i32_0 = arith.constant 0 : i32
    return %arg0, %c0_i32 : i32, i32
  }
}

</mosaic_0001>

<bundles_post_ra>
// kernel: tpu_custom_call.1
= control target key start
LH: loop header
LB: loop body
LE: loop exit
PB: predicated region body
PF: predicated region fallthrough
CT: control target
= control target key end

     0   :  { %s726_s0 = inlined_call_operand.vmem [shape: f32[32,128], index: 0, kind: input, shape index: {}]   ;;  %s727_s1 = inlined_call_operand.vmem [shape: f32[1,128], index: 1, kind: input, shape index: {}]   ;;  %s728_s2 = inlined_call_operand.vmem [shape: f32[1,128], index: 2, kind: input, shape index: {}]   ;;  %s729_s3 = inlined_call_operand.vmem [shape: bf16[128,4], index: 3, kind: input, shape index: {}]   ;;  %s730_s4 = inlined_call_operand.vmem [shape: bf16[4,128], index: 4, kind: input, shape index: {}]   ;;  %s731_s5 = inlined_call_operand.hbm [shape: f32[32,128], index: 5, kind: output, shape index: {}]  }
   0x1   :  { %v545_v0 = vld [vmem:[%s729_s3 + $0x38] sm:$0xff]  ;;  %v544_v1 = vld [vmem:[%s729_s3 + $0x30] sm:$0xff] }
   0x2   :  { %105 = vmatpush.bf16.msra.mxu0 %v545_v0  ;;  %136 = vmatpush.bf16.msra.mxu1 %v545_v0 }
   0x3   :  { %177 = vmatpush.bf16.msra.mxu2 %v545_v0  ;;  %208 = vmatpush.bf16.msra.mxu3 %v545_v0 }
   0x4   :  { %10 = vsyncpa [#allocation3], 0  ;;  %v543_v2 = vld [vmem:[%s729_s3 + $0x28] sm:$0xff]  ;;  %v542_v3 = vld [vmem:[%s729_s3 + $0x20] sm:$0xff]  ;;  %vm308_vm0 = vcmask 1041408   ;;  %vm301_vm8 = vcmask 31744  }
   0x5   :  { %v633_v4 = vld [vmem:[%s726_s0] sm:$0xff]  ;;  %v638_v5 = vld [vmem:[%s726_s0 + $0x8] sm:$0xff]  ;;  %v541_v6 = vld [vmem:[%s729_s3 + $0x18] sm:$0xff]  ;;  %s486_s22 = sshll.u32 %s731_s5, 4  ;;  %s586_s23 = smov 128   ;;  %s487_s22 = int_to_ptr.hbm [resolvable:$true] %s486_s22 }
   0x6   :  { %106 = vmatpush.bf16.msra.mxu0 %v544_v1  ;;  %137 = vmatpush.bf16.msra.mxu1 %v544_v1  ;;  %v159_v7 = vmul.f32 %v633_v4, %v633_v4  ;;  %v160_v8 = vmul.f32 %v638_v5, %v638_v5  ;;  %v43_v9 = vpack.c.bf16 %v633_v4, %v633_v4  ;;  %v540_v11 = vld [vmem:[%s729_s3 + $0x10] sm:$0xff]  ;;  %v539_v16 = vld [vmem:[%s729_s3 + $0x8] sm:$0xff]  ;;  %v538_v23 = vld [vmem:[%s729_s3] sm:$0xff]  ;;  %s587_s24 = smov 8  }
   0x7   :  { %178 = vmatpush.bf16.msra.mxu2 %v544_v1  ;;  %209 = vmatpush.bf16.msra.mxu3 %v544_v1  ;;  %v44_v10 = vpack.c.bf16 %v638_v5, %v638_v5  ;;  %v665_v28 = vld [vmem:[%s726_s0 + $0x10] sm:$0xff]  ;;  %v670_v29 = vld [vmem:[%s726_s0 + $0x18] sm:$0xff] }
   0x8   :  { %v163_v12 = vpack.c.bf16 %v159_v7, %v159_v7  ;;  %v164_v13 = vpack.c.bf16 %v160_v8, %v160_v8  ;;  %v47_v14 = vunpack.c.l.bf16 %v43_v9  ;;  %v128_v21 = vunpack.c.l.b16 %v43_v9 }
   0x9   :  { %v48_v15 = vunpack.c.l.bf16 %v44_v10  ;;  %v129_v22 = vunpack.c.l.b16 %v44_v10  ;;  %v161_v32 = vmul.f32 %v665_v28, %v665_v28  ;;  %v162_v35 = vmul.f32 %v670_v29, %v670_v29 }
   0xa   :  { %107 = vmatpush.bf16.msra.mxu0 %v543_v2  ;;  %138 = vmatpush.bf16.msra.mxu1 %v543_v2  ;;  %v167_v17 = vunpack.c.l.bf16 %v163_v12  ;;  %v168_v18 = vunpack.c.l.bf16 %v164_v13  ;;  %v51_v19 = vsub.f32 %v633_v4, %v47_v14  ;;  %v200_v26 = vunpack.c.l.b16 %v163_v12 }
   0xb   :  { %179 = vmatpush.bf16.msra.mxu2 %v543_v2  ;;  %210 = vmatpush.bf16.msra.mxu3 %v543_v2  ;;  %v52_v20 = vsub.f32 %v638_v5, %v48_v15  ;;  %v201_v27 = vunpack.c.l.b16 %v164_v13  ;;  %v132_v31 = vpack.c.b16 %v129_v22, %v128_v21  ;;  %v45_v36 = vpack.c.bf16 %v665_v28, %v665_v28 }
   0xc   :  { %v171_v24 = vsub.f32 %v159_v7, %v167_v17  ;;  %v172_v25 = vsub.f32 %v160_v8, %v168_v18  ;;  %v46_v37 = vpack.c.bf16 %v670_v29, %v670_v29  ;;  %v165_v38 = vpack.c.bf16 %v161_v32, %v161_v32  ;;  %v42_v7 = vld [vmem:[%s730_s4] sm:$0x3] }
   0xd   :  { %v55_v30 = vpack.c.bf16 %v52_v20, %v51_v19  ;;  %v204_v34 = vpack.c.b16 %v201_v27, %v200_v26  ;;  %v166_v39 = vpack.c.bf16 %v162_v35, %v162_v35  ;;  %v49_v40 = vunpack.c.l.bf16 %v45_v36 }
   0xe   :  { %108 = vmatpush.bf16.msra.mxu0 %v542_v3  ;;  %139 = vmatpush.bf16.msra.mxu1 %v542_v3  ;;  %v175_v33 = vpack.c.bf16 %v172_v25, %v171_v24  ;;  %v50_v41 = vunpack.c.l.bf16 %v46_v37  ;;  %v169_v42 = vunpack.c.l.bf16 %v165_v38  ;;  %v130_v46 = vunpack.c.l.b16 %v45_v36 }
   0xf   :  { %180 = vmatpush.bf16.msra.mxu2 %v542_v3  ;;  %211 = vmatpush.bf16.msra.mxu3 %v542_v3  ;;  %v170_v43 = vunpack.c.l.bf16 %v166_v39  ;;  %v53_v44 = vsub.f32 %v665_v28, %v49_v40  ;;  %v131_v47 = vunpack.c.l.b16 %v46_v37  ;;  %v202_v50 = vunpack.c.l.b16 %v165_v38 }
  0x10   :  { %v54_v45 = vsub.f32 %v670_v29, %v50_v41  ;;  %v173_v48 = vsub.f32 %v161_v32, %v169_v42  ;;  %v203_v51 = vunpack.c.l.b16 %v166_v39  ;;  %v310_v10 = vsel %vm308_vm0, %v42_v7, 0 }
  0x11   :  { %v174_v49 = vsub.f32 %v162_v35, %v170_v43  ;;  %v133_v53 = vpack.c.b16 %v131_v47, %v130_v46 }
  0x12   :  { %109 = vmatpush.bf16.msra.mxu0 %v541_v6  ;;  %140 = vmatpush.bf16.msra.mxu1 %v541_v6  ;;  %v56_v52 = vpack.c.bf16 %v54_v45, %v53_v44  ;;  %v205_v55 = vpack.c.b16 %v203_v51, %v202_v50 }
  0x13   :  { %181 = vmatpush.bf16.msra.mxu2 %v541_v6  ;;  %212 = vmatpush.bf16.msra.mxu3 %v541_v6  ;;  %v176_v54 = vpack.c.bf16 %v174_v49, %v173_v48 }
  0x16   :  { %110 = vmatpush.bf16.msra.mxu0 %v540_v11  ;;  %141 = vmatpush.bf16.msra.mxu1 %v540_v11 }
  0x17   :  { %182 = vmatpush.bf16.msra.mxu2 %v540_v11  ;;  %213 = vmatpush.bf16.msra.mxu3 %v540_v11 }
  0x1a   :  { %111 = vmatpush.bf16.msra.mxu0 %v539_v16  ;;  %142 = vmatpush.bf16.msra.mxu1 %v539_v16 }
  0x1b   :  { %183 = vmatpush.bf16.msra.mxu2 %v539_v16  ;;  %214 = vmatpush.bf16.msra.mxu3 %v539_v16 }
  0x1e   :  { %112 = vmatpush.bf16.msra.mxu0 %v538_v23  ;;  %143 = vmatpush.bf16.msra.mxu1 %v538_v23 }
  0x1f   :  { %184 = vmatpush.bf16.msra.mxu2 %v538_v23  ;;  %215 = vmatpush.bf16.msra.mxu3 %v538_v23 }
  0x21   :  { %113 = vmatmul.bf16.vlgmr.msra.gmra.mxu0 %v55_v30  ;;  %144 = vmatmul.bf16.vlgmr.msra.gmra.mxu1 %v132_v31 }
  0x22   :  { %185 = vmatmul.bf16.vlgmr.msra.gmra.mxu2 %v175_v33  ;;  %216 = vmatmul.bf16.vlgmr.msra.gmra.mxu3 %v204_v34 }
  0x23   :  { %401 = vmatpush.bf16.msrb.mxu2 %v310_v10  ;;  %436 = vmatpush.bf16.msrb.mxu3 %v310_v10 }
  0x24   :  { %319 = vmatpush.bf16.msrb.mxu0 %v310_v10  ;;  %354 = vmatpush.bf16.msrb.mxu1 %v310_v10 }
  0x31   :  { %118 = vmatmul.bf16.gmra.mxu0 %v56_v52  ;;  %149 = vmatmul.bf16.gmra.mxu1 %v133_v53 }
  0x32   :  { %190 = vmatmul.bf16.gmra.mxu2 %v176_v54  ;;  %221 = vmatmul.bf16.gmra.mxu3 %v205_v55 }
  0x9e   :  { %v114_v56 = vpop.f32.mrf.mxu0  ;;  %v145_v57 = vpop.f32.mrf.mxu1 }
  0x9f   :  { %v146_v58 = vadd.f32 %v145_v57, %v114_v56 }
  0xa1   :  { %v682_v59 = vmul.f32 0.03125, %v146_v58 }
  0xa3   :  { %v231_v62 = vmul.f32 %v682_v59, %v682_v59 }
  0xa5   :  { %v186_v60 = vpop.f32.mrf.mxu2  ;;  %v217_v61 = vpop.f32.mrf.mxu3 }
  0xa6   :  { %v218_v63 = vadd.f32 %v217_v61, %v186_v60  ;;  %v116_v0 = vpop.f32.mrf.mxu0  ;;  %v147_v1 = vpop.f32.mrf.mxu1 }
  0xa7   :  { %v148_v3 = vadd.f32 %v147_v1, %v116_v0 }
  0xa8   :  { %v227_v2 = vmul.f32 0.03125, %v218_v63 }
  0xa9   :  { %v689_v9 = vmul.f32 0.03125, %v148_v3 }
  0xaa   :  { %v235_v6 = vsub.f32 %v227_v2, %v231_v62 }
  0xab   :  { %v232_v18 = vmul.f32 %v689_v9, %v689_v9 }
  0xac   :  { %v239_v8 = vmax.f32 %v235_v6, 0.0 }
  0xad   :  { %v188_v11 = vpop.f32.mrf.mxu2  ;;  %v219_v12 = vpop.f32.mrf.mxu3 }
  0xae   :  { %v243_v13 = vadd.f32 1e-06, %v239_v8  ;;  %v220_v14 = vadd.f32 %v219_v12, %v188_v11  ;;  %v119_v15 = vpop.f32.mrf.mxu0  ;;  %v150_v16 = vpop.f32.mrf.mxu1 }
  0xaf   :  { %v151_v17 = vadd.f32 %v150_v16, %v119_v15 }
  0xb0   :  { %551 = vrsqrt.f32 %v243_v13  ;;  %v228_v19 = vmul.f32 0.03125, %v220_v14  ;;  %vm253_vm2 = vweird.f32 %v243_v13 }
  0xb1   :  { %v693_v21 = vmul.f32 0.03125, %v151_v17 }
  0xb2   :  { %v236_v20 = vsub.f32 %v228_v19, %v232_v18 }
  0xb3   :  { %v233_v27 = vmul.f32 %v693_v21, %v693_v21 }
  0xb4   :  { %v240_v22 = vmax.f32 %v236_v20, 0.0 }
  0xb5   :  { %v191_v23 = vpop.f32.mrf.mxu2  ;;  %v222_v24 = vpop.f32.mrf.mxu3 }
  0xb6   :  { %v552_v25 = vpop.eup %551  ;;  %v244_v26 = vadd.f32 1e-06, %v240_v22  ;;  %v223_v30 = vadd.f32 %v222_v24, %v191_v23  ;;  %v121_v31 = vpop.f32.mrf.mxu0 }
  0xb7   :  { %v152_v32 = vpop.f32.mrf.mxu1  ;;  %v248_v33 = vmul.f32 %v552_v25, %v243_v13  ;;  %vm254_vm1 = vweird.f32 %v552_v25 }
  0xb8   :  { %553 = vrsqrt.f32 %v244_v26  ;;  %v229_v34 = vmul.f32 0.03125, %v223_v30  ;;  %v153_v35 = vadd.f32 %v152_v32, %v121_v31  ;;  %vm255_vm3 = vmor %vm253_vm2, %vm254_vm1  ;;  %vm263_vm5 = vweird.f32 %v244_v26 }
  0xb9   :  { %v249_v36 = vmul.f32 %v552_v25, %v248_v33 }
  0xba   :  { %v237_v37 = vsub.f32 %v229_v34, %v233_v27  ;;  %v697_v40 = vmul.f32 0.03125, %v153_v35 }
  0xbb   :  { %v250_v38 = vmul.f32 0.5, %v249_v36 }
  0xbc   :  { %v241_v39 = vmax.f32 %v237_v37, 0.0  ;;  %v234_v49 = vmul.f32 %v697_v40, %v697_v40 }
  0xbd   :  { %v251_v41 = vsub.f32 1.5, %v250_v38  ;;  %v193_v42 = vpop.f32.mrf.mxu2  ;;  %v224_v43 = vpop.f32.mrf.mxu3 }
  0xbe   :  { %v554_v44 = vpop.eup %553  ;;  %v245_v45 = vadd.f32 1e-06, %v241_v39  ;;  %v225_v46 = vadd.f32 %v224_v43, %v193_v42 }
  0xbf   :  { %v252_v47 = vmul.f32 %v552_v25, %v251_v41  ;;  %v258_v48 = vmul.f32 %v554_v44, %v244_v26  ;;  %vm264_vm4 = vweird.f32 %v554_v44 }
  0xc0   :  { %555 = vrsqrt.f32 %v245_v45  ;;  %v230_v50 = vmul.f32 0.03125, %v225_v46  ;;  %vm265_vm6 = vmor %vm263_vm5, %vm264_vm4  ;;  %vm273_vm9 = vweird.f32 %v245_v45 }
  0xc1   :  { %v256_v51 = vsel %vm255_vm3, %v552_v25, %v252_v47  ;;  %v259_v52 = vmul.f32 %v554_v44, %v258_v48 }
  0xc2   :  { %v238_v53 = vsub.f32 %v230_v50, %v234_v49  ;;  %v366_v54 = vmul.f32 %v256_v51, %v682_v59  ;;  %v287_v58 = vpack.c.bf16 %v256_v51, %v256_v51 }
  0xc3   :  { %v260_v55 = vmul.f32 0.5, %v259_v52 }
  0xc4   :  { %v242_v56 = vmax.f32 %v238_v53, 0.0  ;;  %v370_v62 = vsub.f32 0.0, %v366_v54  ;;  %v291_v3 = vunpack.c.l.bf16 %v287_v58  ;;  %v335_v10 = vunpack.c.l.b16 %v287_v58 }
  0xc5   :  { %v261_v57 = vsub.f32 1.5, %v260_v55 }
  0xc6   :  { %v556_v60 = vpop.eup %555  ;;  %v246_v61 = vadd.f32 1e-06, %v242_v56  ;;  %v374_v59 = vpack.c.bf16 %v370_v62, %v370_v62  ;;  %v295_v15 = vsub.f32 %v256_v51, %v291_v3 }
  0xc7   :  { %v262_v63 = vmul.f32 %v554_v44, %v261_v57  ;;  %v268_v0 = vmul.f32 %v556_v60, %v245_v45  ;;  %vm274_vm7 = vweird.f32 %v556_v60 }
  0xc8   :  { %557 = vrsqrt.f32 %v246_v61  ;;  %v378_v20 = vunpack.c.l.bf16 %v374_v59  ;;  %vm275_vm10 = vmor %vm273_vm9, %vm274_vm7  ;;  %v417_v24 = vunpack.c.l.b16 %v374_v59  ;;  %vm283_vm12 = vweird.f32 %v246_v61 }
  0xc9   :  { %v266_v1 = vsel %vm265_vm6, %v554_v44, %v262_v63  ;;  %v269_v2 = vmul.f32 %v556_v60, %v268_v0 }
  0xca   :  { %v288_v6 = vpack.c.bf16 %v266_v1, %v266_v1  ;;  %v367_v7 = vmul.f32 %v266_v1, %v689_v9  ;;  %v382_v32 = vsub.f32 %v370_v62, %v378_v20 }
  0xcb   :  { %v270_v8 = vmul.f32 0.5, %v269_v2  ;;  %v549_v2 = vld [vmem:[%s727_s1] ss:$0 sm:$0xff]  ;;  %s585_s1 = smov [#allocation2]  }
  0xcc   :  { %v336_v11 = vunpack.c.l.b16 %v288_v6  ;;  %v292_v12 = vunpack.c.l.bf16 %v288_v6  ;;  %v371_v13 = vsub.f32 0.0, %v367_v7 }
  0xcd   :  { %v271_v14 = vsub.f32 1.5, %v270_v8 }
  0xce   :  { %v558_v16 = vpop.eup %557  ;;  %v339_v17 = vpack.c.b16 %v336_v11, %v335_v10  ;;  %v296_v18 = vsub.f32 %v266_v1, %v292_v12  ;;  %v375_v19 = vpack.c.bf16 %v371_v13, %v371_v13  ;;  %v550_v11 = vld [vmem:[%s728_s2] ss:$0 sm:$0xff]  ;;  %s484_s2 = sshll.u32 %s585_s1, 4  ;;  %s485_s2 = int_to_ptr.vmem [resolvable:$true] %s484_s2 }
  0xcf   :  { %v272_v22 = vmul.f32 %v556_v60, %v271_v14  ;;  %v278_v23 = vmul.f32 %v558_v16, %v246_v61  ;;  %vm284_vm11 = vweird.f32 %v558_v16 }
  0xd0   :  { %532 = vmatmul.msk.bf16.vlgmr.msrb.gmra.mxu1 %vm301_vm8, %v339_v17  ;;  %v299_v9 = vpack.c.bf16 %v296_v18, %v295_v15  ;;  %v418_v25 = vunpack.c.l.b16 %v375_v19  ;;  %v379_v26 = vunpack.c.l.bf16 %v375_v19  ;;  %vm285_vm13 = vmor %vm283_vm12, %vm284_vm11 }
  0xd1   :  { %v279_v27 = vmul.f32 %v558_v16, %v278_v23  ;;  %v276_v30 = vsel %vm275_vm10, %v556_v60, %v272_v22 }
  0xd2   :  { %530 = vmatmul.msk.bf16.vlgmr.msrb.gmra.mxu0 %vm301_vm8, %v299_v9  ;;  %v421_v31 = vpack.c.b16 %v418_v25, %v417_v24  ;;  %v383_v33 = vsub.f32 %v371_v13, %v379_v26  ;;  %v368_v34 = vmul.f32 %v276_v30, %v693_v21  ;;  %v289_v38 = vpack.c.bf16 %v276_v30, %v276_v30 }
  0xd3   :  { %v280_v35 = vmul.f32 0.5, %v279_v27 }
  0xd4   :  { %536 = vmatmul.msk.bf16.vlgmr.msrb.gmra.mxu3 %vm301_vm8, %v421_v31  ;;  %v386_v36 = vpack.c.bf16 %v383_v33, %v382_v32  ;;  %v372_v39 = vsub.f32 0.0, %v368_v34  ;;  %v293_v43 = vunpack.c.l.bf16 %v289_v38  ;;  %v337_v21 = vunpack.c.l.b16 %v289_v38 }
  0xd5   :  { %v281_v37 = vsub.f32 1.5, %v280_v35 }
  0xd6   :  { %534 = vmatmul.msk.bf16.vlgmr.msrb.gmra.mxu2 %vm301_vm8, %v386_v36  ;;  %v376_v46 = vpack.c.bf16 %v372_v39, %v372_v39  ;;  %v297_v50 = vsub.f32 %v276_v30, %v293_v43 }
  0xd7   :  { %v282_v41 = vmul.f32 %v558_v16, %v281_v37 }
  0xd8   :  { %v380_v54 = vunpack.c.l.bf16 %v376_v46  ;;  %v419_v56 = vunpack.c.l.b16 %v376_v46 }
  0xd9   :  { %v286_v42 = vsel %vm285_vm13, %v558_v16, %v282_v41 }
  0xda   :  { %v290_v44 = vpack.c.bf16 %v286_v42, %v286_v42  ;;  %v369_v45 = vmul.f32 %v286_v42, %v697_v40  ;;  %v384_v40 = vsub.f32 %v372_v39, %v380_v54 }
  0xdc   :  { %v338_v47 = vunpack.c.l.b16 %v290_v44  ;;  %v294_v48 = vunpack.c.l.bf16 %v290_v44  ;;  %v373_v49 = vsub.f32 0.0, %v369_v45 }
  0xde   :  { %v340_v51 = vpack.c.b16 %v338_v47, %v337_v21  ;;  %v298_v52 = vsub.f32 %v286_v42, %v294_v48  ;;  %v377_v53 = vpack.c.bf16 %v373_v49, %v373_v49 }
  0xe0   :  { %533 = vmatmul.msk.bf16.gmra.mxu1 %vm301_vm8, %v340_v51  ;;  %v300_v55 = vpack.c.bf16 %v298_v52, %v297_v50  ;;  %v420_v57 = vunpack.c.l.b16 %v377_v53  ;;  %v381_v58 = vunpack.c.l.bf16 %v377_v53 }
  0xe2   :  { %531 = vmatmul.msk.bf16.gmra.mxu0 %vm301_vm8, %v300_v55  ;;  %v422_v60 = vpack.c.b16 %v420_v57, %v419_v56  ;;  %v385_v61 = vsub.f32 %v373_v49, %v381_v58 }
  0xe4   :  { %537 = vmatmul.msk.bf16.gmra.mxu3 %vm301_vm8, %v422_v60  ;;  %v387_v62 = vpack.c.bf16 %v385_v61, %v384_v40 }
  0xe6   :  { %535 = vmatmul.msk.bf16.gmra.mxu2 %vm301_vm8, %v387_v62 }
 0x14d   :  { %v356_v63 = vpop.f32.mrf.mxu1 }
 0x14f   :  { %v321_v0 = vpop.f32.mrf.mxu0 }
 0x150   :  { %v357_v1 = vadd.f32 %v356_v63, %v321_v0 }
 0x152   :  { %v453_v8 = vmul.f32 %v549_v2, %v357_v1 }
 0x154   :  { %v457_v13 = vmul.f32 %v453_v8, %v633_v4 }
 0x155   :  { %v358_v7 = vpop.f32.mrf.mxu1 }
 0x157   :  { %v323_v3 = vpop.f32.mrf.mxu0  ;;  %v438_v6 = vpop.f32.mrf.mxu3 }
 0x158   :  { %v359_v14 = vadd.f32 %v358_v7, %v323_v3 }
 0x159   :  { %v403_v59 = vpop.f32.mrf.mxu2 }
 0x15a   :  { %v439_v10 = vadd.f32 %v438_v6, %v403_v59  ;;  %v454_v20 = vmul.f32 %v549_v2, %v359_v14 }
 0x15c   :  { %v461_v12 = vmul.f32 %v549_v2, %v439_v10  ;;  %v458_v24 = vmul.f32 %v454_v20, %v638_v5 }
 0x15d   :  { %v361_v23 = vpop.f32.mrf.mxu1 }
 0x15e   :  { %v468_v15 = vadd.f32 %v550_v11, %v461_v12 }
 0x15f   :  { %v440_v16 = vpop.f32.mrf.mxu3  ;;  %v326_v18 = vpop.f32.mrf.mxu0 }
 0x160   :  { %v472_v17 = vadd.f32 %v468_v15, %v457_v13  ;;  %v362_v25 = vadd.f32 %v361_v23, %v326_v18 }
 0x161   :  { %v405_v19 = vpop.f32.mrf.mxu2 }
 0x162   :  { %476 = vst [vmem:[#allocation2] sm:$0xff] %v472_v17  ;;  %v441_v22 = vadd.f32 %v440_v16, %v405_v19  ;;  %v455_v32 = vmul.f32 %v549_v2, %v362_v25 }
 0x164   :  { %v462_v9 = vmul.f32 %v549_v2, %v441_v22  ;;  %v459_v36 = vmul.f32 %v455_v32, %v665_v28 }
 0x165   :  { %v363_v35 = vpop.f32.mrf.mxu1 }
 0x166   :  { %v469_v26 = vadd.f32 %v550_v11, %v462_v9 }
 0x167   :  { %v443_v27 = vpop.f32.mrf.mxu3  ;;  %v328_v33 = vpop.f32.mrf.mxu0 }
 0x168   :  { %v473_v30 = vadd.f32 %v469_v26, %v458_v24  ;;  %v364_v37 = vadd.f32 %v363_v35, %v328_v33 }
 0x169   :  { %v408_v31 = vpop.f32.mrf.mxu2 }
 0x16a   :  { %477 = vst [vmem:[#allocation2 + $0x8] sm:$0xff] %v473_v30  ;;  %v444_v4 = vadd.f32 %v443_v27, %v408_v31  ;;  %v456_v43 = vmul.f32 %v549_v2, %v364_v37 }
 0x16c   :  { %v463_v34 = vmul.f32 %v549_v2, %v444_v4  ;;  %v460_v45 = vmul.f32 %v456_v43, %v670_v29 }
 0x16e   :  { %v470_v38 = vadd.f32 %v550_v11, %v463_v34 }
 0x16f   :  { %v445_v41 = vpop.f32.mrf.mxu3 }
 0x170   :  { %v474_v39 = vadd.f32 %v470_v38, %v459_v36 }
 0x171   :  { %v410_v42 = vpop.f32.mrf.mxu2 }
 0x172   :  { %478 = vst [vmem:[#allocation2 + $0x10] sm:$0xff] %v474_v39  ;;  %v446_v5 = vadd.f32 %v445_v41, %v410_v42 }
 0x174   :  { %v464_v44 = vmul.f32 %v549_v2, %v446_v5 }
 0x176   :  { %v471_v46 = vadd.f32 %v550_v11, %v464_v44 }
 0x178   :  { %v475_v28 = vadd.f32 %v471_v46, %v460_v45 }
 0x17a   :  { %479 = vst [vmem:[#allocation2 + $0x18] sm:$0xff] %v475_v28 }
 0x17b   :  { %492 = dma.vmem_to_hbm [thread:$0]  %s485_s2, 512, %s487_s22, [#allocation3], %s586_s23, %s586_s23, %s587_s24  }
 0x17c   :  { %583 = dma.done.wait [#allocation3], 512  }
 0x17d   :  { %584 = vsyncadd [#allocation3], 4294966784 }
 0x17e   :  { %497 = vsyncpa [#allocation3], 1 }

</bundles_post_ra>
